<compile_context>
chip_gen: v7x
topology: tpu7x:2x2x1
jax: 0.10.0
libtpu: 0.0.40
codegen_flags: <defaults>
</compile_context>

<pallas_src>
import jax
import jax.numpy as jnp
from jax.experimental import pallas as pl
from jax.experimental.pallas import tpu as pltpu

LANES = 128
SMALL_BYTES = 256 * 1024            # below this, reshape is metadata-only: skip the kernel
TARGET_CHUNK_BYTES = 4 * 1024 * 1024  # ~4 MiB per DMA descriptor on large slabs
MAX_INFLIGHT = 8                    # max concurrent DMA descriptors


def _resolve_shape(total, shape):
    """Resolve a single -1 dimension like torch.Tensor.view does."""
    shape = list(shape)
    if -1 in shape:
        idx = shape.index(-1)
        known = 1
        for i, s in enumerate(shape):
            if i != idx:
                known *= int(s)
        assert known != 0 and total % known == 0, "invalid shape for view"
        shape[idx] = total // known
    out = 1
    for s in shape:
        out *= int(s)
    assert out == total, "view shape must preserve element count"
    return tuple(int(s) for s in shape)


def _chunk_ranges(dim0, nbytes):
    """Static (start, size) chunks of the leading axis, up to MAX_INFLIGHT pieces."""
    n_by_bytes = max(1, nbytes // TARGET_CHUNK_BYTES)
    n = int(max(1, min(MAX_INFLIGHT, dim0, n_by_bytes)))
    base, rem = divmod(dim0, n)
    ranges, start = [], 0
    for i in range(n):
        size = base + (1 if i < rem else 0)
        if size:
            ranges.append((start, size))
            start += size
    return ranges


def _make_dma_copy_kernel(chunks):
    """Kernel factory: direct HBM->HBM identity copy with `len(chunks)` in-flight DMAs."""
    def kernel(x_hbm, o_hbm, sems):
        descs = []
        for idx, (start, size) in enumerate(chunks):   # static Python loop
            cp = pltpu.make_async_copy(
                x_hbm.at[pl.ds(start, size)],
                o_hbm.at[pl.ds(start, size)],
                sems.at[idx],
            )
            cp.start()
            descs.append(cp)
        for cp in descs:
            cp.wait()
    return kernel


def _dma_identity_copy(arr):
    """HBM->HBM identity copy of `arr` (any shape/dtype) via chunked async DMA."""
    nbytes = int(arr.size) * jnp.dtype(arr.dtype).itemsize
    chunks = _chunk_ranges(int(arr.shape[0]), nbytes)
    return pl.pallas_call(
        _make_dma_copy_kernel(chunks),
        out_shape=jax.ShapeDtypeStruct(arr.shape, arr.dtype),
        in_specs=[pl.BlockSpec(memory_space=pl.ANY)],   # raw HBM ref, no auto-DMA
        out_specs=pl.BlockSpec(memory_space=pl.ANY),    # raw HBM ref, no auto-DMA
        scratch_shapes=[pltpu.SemaphoreType.DMA((len(chunks),))],
    )(arr)


def pallas_reshape(x, *shape, force_kernel=False):
    """Equivalent of torch.Tensor.view(*shape): same row-major data, new shape."""
    total = int(x.size)
    out_shape = _resolve_shape(total, shape)
    nbytes = total * jnp.dtype(x.dtype).itemsize

    # A contiguous view is metadata-only; for small tensors the kernel launch alone
    # is 10-100x slower than the free reshape, so short-circuit unless forced.
    if not force_kernel and nbytes < SMALL_BYTES:
        return jnp.reshape(x, out_shape)

    if total % LANES == 0 and x.ndim >= 1:
        # Common aligned case: present a lane-dense [rows, 128] slab so the leading
        # axis chunks cleanly into contiguous DMA descriptors.
        slab = jnp.reshape(x, (total // LANES, LANES))
    elif x.ndim >= 1:
        # Ragged case: copy the ref in its original shape -- a single contiguous DMA,
        # no padding / concatenate / un-pad slice (was ~3x the necessary HBM traffic).
        slab = x
    else:
        slab = jnp.reshape(x, (1,))

    out = _dma_identity_copy(slab)
    return jnp.reshape(out, out_shape)   # free metadata-only reshape of the copy


if __name__ == "__main__":
    key = jax.random.PRNGKey(0)

    # Aligned path (2*4*16*16 = 2048 elements, multiple of 128): force the DMA kernel.
    x = jax.random.normal(key, (2, 4, 16, 16), dtype=jnp.float32)
    y = jax.block_until_ready(pallas_reshape(x, 2, -1, force_kernel=True))
    assert y.shape == (2, 4 * 16 * 16)
    assert jnp.array_equal(y, x.reshape(2, -1))

    # Ragged path (2*4*15*15 = 1800, not a multiple of 128): whole-ref DMA, no padding.
    x2 = jax.random.normal(jax.random.PRNGKey(1), (2, 4, 15, 15), dtype=jnp.float32)
    y2 = jax.block_until_ready(pallas_reshape(x2, 2, -1, force_kernel=True))
    assert y2.shape == (2, 4 * 15 * 15)
    assert jnp.array_equal(y2, x2.reshape(2, -1))

    # Default path: small tensor short-circuits to a metadata-only reshape.
    y3 = jax.block_until_ready(pallas_reshape(x, 2, 4, 256))
    assert y3.shape == (2, 4, 256)
    assert jnp.array_equal(y3, x.reshape(2, 4, 256))

    print("KERNEL_OK")
</pallas_src>

<mosaic_0001>
module attributes {stable_mosaic.version = 11 : i64} {
  func.func @kernel(%arg0: memref<16x128xf32, #tpu.memory_space<any>>, %arg1: memref<16x128xf32, #tpu.memory_space<any>>, %arg2: memref<1x!tpu.dma_semaphore, #tpu.memory_space<semaphore_mem>>) attributes {dimension_semantics = [], scalar_prefetch = 0 : i64, scratch_operands = 1 : i64, tpu.core_type = #tpu.core_type<tc>} {
    %c0_i32 = arith.constant 0 : i32
    %c0_i32_0 = arith.constant 0 : i32
    %c0_i32_1 = arith.constant 0 : i32
    %0 = tpu.memref_slice %arg0[%c0_i32_0, %c0_i32_1] : memref<16x128xf32, #tpu.memory_space<any>> -> memref<16x128xf32, #tpu.memory_space<any>>
    %c0_i32_2 = arith.constant 0 : i32
    %c0_i32_3 = arith.constant 0 : i32
    %1 = tpu.memref_slice %arg1[%c0_i32_2, %c0_i32_3] : memref<16x128xf32, #tpu.memory_space<any>> -> memref<16x128xf32, #tpu.memory_space<any>>
    %2 = tpu.memref_slice %arg2[%c0_i32] : memref<1x!tpu.dma_semaphore, #tpu.memory_space<semaphore_mem>> -> memref<1x!tpu.dma_semaphore, #tpu.memory_space<semaphore_mem>>
    %3 = tpu.memref_squeeze %2 : memref<1x!tpu.dma_semaphore, #tpu.memory_space<semaphore_mem>> -> memref<!tpu.dma_semaphore, #tpu.memory_space<semaphore_mem>>
    tpu.enqueue_dma source(%0 : memref<16x128xf32, #tpu.memory_space<any>>) target(%1 : memref<16x128xf32, #tpu.memory_space<any>>) target_semaphore(%3 : memref<!tpu.dma_semaphore, #tpu.memory_space<semaphore_mem>>)
    %c0_i32_4 = arith.constant 0 : i32
    %c0_i32_5 = arith.constant 0 : i32
    %c0_i32_6 = arith.constant 0 : i32
    %4 = tpu.memref_slice %arg0[%c0_i32_5, %c0_i32_6] : memref<16x128xf32, #tpu.memory_space<any>> -> memref<16x128xf32, #tpu.memory_space<any>>
    %c0_i32_7 = arith.constant 0 : i32
    %c0_i32_8 = arith.constant 0 : i32
    %5 = tpu.memref_slice %arg1[%c0_i32_7, %c0_i32_8] : memref<16x128xf32, #tpu.memory_space<any>> -> memref<16x128xf32, #tpu.memory_space<any>>
    %6 = tpu.memref_slice %arg2[%c0_i32_4] : memref<1x!tpu.dma_semaphore, #tpu.memory_space<semaphore_mem>> -> memref<1x!tpu.dma_semaphore, #tpu.memory_space<semaphore_mem>>
    %7 = tpu.memref_squeeze %6 : memref<1x!tpu.dma_semaphore, #tpu.memory_space<semaphore_mem>> -> memref<!tpu.dma_semaphore, #tpu.memory_space<semaphore_mem>>
    tpu.wait_dma2 semaphore(%7 : memref<!tpu.dma_semaphore, #tpu.memory_space<semaphore_mem>>) src(%4 : memref<16x128xf32, #tpu.memory_space<any>>) dst(%5 : memref<16x128xf32, #tpu.memory_space<any>>)
    return
  }
}

</mosaic_0001>

<bundles_post_ra>
// kernel: tpu_custom_call.1
= control target key start
LH: loop header
LB: loop body
LE: loop exit
PB: predicated region body
PF: predicated region fallthrough
CT: control target
= control target key end

     0   :  { %s34_s6 = smov [#allocation2]   ;;  %s35_s7 = smov [#allocation3]   ;;  %s53_s0 = inlined_call_operand.hbm [shape: f32[16,128], index: 0, kind: input, shape index: {}]   ;;  %s54_s1 = inlined_call_operand.hbm [shape: f32[16,128], index: 1, kind: output, shape index: {}]  }
   0x1   :  { %s36_s8 = smov 0  }
   0x2   :  { %18 = dma.general %s53_s0, 256, %s54_s1, %s34_s6, %s35_s7, [#allocation4], %s36_s8, 0  }
   0x3   :  { %32 = dma.done.wait [#allocation2], 256 }
   0x4   :  { %33 = vsyncadd [#allocation2], 4294967040 }
   0x5   :  { %22 = vsyncmov [#allocation2] }
   0x8   :  { %s23_s13 = vpop.sfrf %22 }
   0x9   :  { %p28_p0 = scmp.ne.s32.totalorder %s23_s13, 0 }
   0xb   :  { %27 = shalt.err (%p28_p0)  }

</bundles_post_ra>
